<compile_context>
chip_gen: v6e
topology: v6e:2x2x1
jax: 0.10.0
libtpu: 0.0.40
codegen_flags: <defaults>
</compile_context>

<pallas_src>
import jax
import jax.numpy as jnp
import numpy as np
from jax.experimental import pallas as pl
from jax.experimental.pallas import tpu as pltpu


def _copy_kernel(x_ref, o_ref):
    # Dense streaming copy of the already-selected neighbor indices.
    o_ref[...] = x_ref[...]


def _round_up(v, m):
    return -(-v // m) * m


def _target_step_bytes():
    # Per-grid-step (input + output) HBM byte target.  ~0.35 us fixed step
    # overhead => ~2-4 MiB/step reaches the ~85% roofline regime on v5e/v6e;
    # v7x (3.2 TB/s) wants ~8 MiB.  Double-buffered in+out VMEM = 2x this
    # (8 MiB, 16 MiB on v7x) -- inside every generation's scoped-VMEM default.
    try:
        kind = jax.devices()[0].device_kind.lower()
    except Exception:
        kind = ""
    return (8 << 20) if "v7" in kind else (4 << 20)


def _pick_row_tile(num_rows, padded_row_bytes, target_step_bytes):
    """Rows per grid step: ~target bytes/step (in+out), multiple of 8, >=2 steps."""
    tr = max(8, int(target_step_bytes // (2 * padded_row_bytes)))
    tr -= tr % 8
    if num_rows >= 16:
        # Guarantee >= 2 grid steps so the "parallel" axis can shard across
        # both TensorCores on v7x (v5e/v6e have one TC and are unaffected).
        half = _round_up(-(-num_rows // 2), 8)
        tr = min(tr, half)
    return num_rows if tr >= num_rows else tr


def dense_dilated(edge_index, dilation, k=None, *, target_step_bytes=None):
    """JAX/Pallas equivalent of DenseDilated(k, dilation).forward (stochastic=False).

    edge_index: int array of shape (2, B, N, KD)
    returns:    int array of shape (2, B, N, ceil(KD / dilation))
                == edge_index[:, :, :, ::dilation]
    """
    two, B, N, KD = edge_index.shape
    assert two == 2
    assert dilation >= 1
    k_out = -(-KD // dilation)  # ceil(KD / dilation): what [..., ::dilation] keeps
    if k is not None:
        assert k == k_out, (
            f"k={k} inconsistent with KD={KD}, dilation={dilation}: "
            f"edge_index[..., ::dilation] keeps {k_out} neighbors")

    # 1) Dilation pick: one XLA strided slice on the natural layout.
    #    No pad (a padded tail would never be selected anyway), no transpose.
    sel = edge_index if dilation == 1 else edge_index[:, :, :, ::dilation]

    dtype = sel.dtype
    itemsize = jnp.dtype(dtype).itemsize
    S = 2 * B * N * k_out  # total kept elements (contiguous in HBM)

    # 2) Stream the kept data through a dense Pallas copy.  Prefer a
    #    lane-dense (rows, 128) view (free reshape of the contiguous selection);
    #    fall back to the natural narrow view only for odd/tiny shapes.
    if S % 128 == 0:
        lanes = 128
        rows = S // 128
    else:
        lanes = k_out            # full-extent narrow minor dim (small shapes only)
        rows = 2 * B * N
    x2 = sel.reshape(rows, lanes)

    if target_step_bytes is None:
        target_step_bytes = _target_step_bytes()
    padded_row_bytes = _round_up(lanes, 128) * itemsize  # VMEM pads lanes to 128
    tr = _pick_row_tile(rows, padded_row_bytes, target_step_bytes)

    out2 = pl.pallas_call(
        _copy_kernel,
        out_shape=jax.ShapeDtypeStruct((rows, lanes), dtype),
        grid=(pl.cdiv(rows, tr),),
        in_specs=[pl.BlockSpec((tr, lanes), lambda j: (j, 0))],
        out_specs=pl.BlockSpec((tr, lanes), lambda j: (j, 0)),
        compiler_params=pltpu.CompilerParams(dimension_semantics=("parallel",)),
        cost_estimate=pl.CostEstimate(
            flops=0, transcendentals=0, bytes_accessed=2 * S * itemsize),
    )(x2)

    return out2.reshape(2, B, N, k_out)


if __name__ == "__main__":
    key = jax.random.PRNGKey(0)

    # Case 1: module-style small shapes: batch=2, num_points=16, k=3, dilation=2
    #         -> last dim = k * dilation = 6.  (S=192 -> narrow fallback path.)
    B, N, k, dilation = 2, 16, 3, 2
    KD = k * dilation
    key, sub = jax.random.split(key)
    ei1 = jax.random.randint(sub, (2, B, N, KD), 0, N, dtype=jnp.int32)
    out1 = jax.block_until_ready(dense_dilated(ei1, dilation, k=k))
    ref1 = np.asarray(ei1)[:, :, :, ::dilation]
    assert out1.shape == ref1.shape == (2, B, N, k), out1.shape
    assert out1.dtype == ei1.dtype
    assert bool(np.array_equal(np.asarray(out1), ref1))

    # Case 2: lane-dense multi-tile path (S = 8192 -> rows=64 -> 2 grid steps,
    #         exercising the megacore >=2-step cap and double-buffered pipeline).
    B2, N2, KD2, dil2 = 2, 256, 16, 2
    key, sub = jax.random.split(key)
    ei2 = jax.random.randint(sub, (2, B2, N2, KD2), 0, N2, dtype=jnp.int32)
    out2 = jax.block_until_ready(dense_dilated(ei2, dil2))
    ref2 = np.asarray(ei2)[:, :, :, ::dil2]
    assert out2.shape == ref2.shape, (out2.shape, ref2.shape)
    assert bool(np.array_equal(np.asarray(out2), ref2))

    # Case 3: KD not divisible by dilation (k_out = ceil(7/3) = 3) and a row
    #         count that forces a ragged, masked last row-tile on the narrow path.
    B3, N3, KD3, dil3 = 2, 40, 7, 3
    key, sub = jax.random.split(key)
    ei3 = jax.random.randint(sub, (2, B3, N3, KD3), 0, N3, dtype=jnp.int32)
    out3 = jax.block_until_ready(dense_dilated(ei3, dil3))
    ref3 = np.asarray(ei3)[:, :, :, ::dil3]
    assert out3.shape == ref3.shape, (out3.shape, ref3.shape)
    assert bool(np.array_equal(np.asarray(out3), ref3))

    print("KERNEL_OK")
</pallas_src>

<mosaic_0001>
module attributes {stable_mosaic.version = 11 : i64} {
  func.func @_copy_kernel(%arg0: i32, %arg1: memref<32x3xi32, #tpu.memory_space<vmem>>, %arg2: memref<32x3xi32, #tpu.memory_space<vmem>>) attributes {dimension_semantics = [#tpu.dimension_semantics<parallel>], iteration_bounds = array<i64: 2>, scalar_prefetch = 0 : i64, scratch_operands = 0 : i64, tpu.core_type = #tpu.core_type<tc>, window_params = [{transform_indices = @transform_0, window_bounds = array<i64: 32, 3>}, {transform_indices = @transform_1, window_bounds = array<i64: 32, 3>}]} {
    %c0 = arith.constant 0 : index
    %c0_0 = arith.constant 0 : index
    %0 = vector.load %arg1[%c0, %c0_0] : memref<32x3xi32, #tpu.memory_space<vmem>>, vector<32x3xi32>
    %c0_1 = arith.constant 0 : index
    %c0_2 = arith.constant 0 : index
    %1 = vector.load %arg2[%c0_1, %c0_2] : memref<32x3xi32, #tpu.memory_space<vmem>>, vector<32x3xi32>
    tpu.vector_store %arg2[%c0_1, %c0_2], %0 {strides = array<i32>} : memref<32x3xi32, #tpu.memory_space<vmem>>, vector<32x3xi32>,
    return
  }
  func.func @transform_0(%arg0: i32) -> (i32, i32) {
    %c0_i32 = arith.constant 0 : i32
    %c0_i32_0 = arith.constant 0 : i32
    return %arg0, %c0_i32 : i32, i32
  }
  func.func @transform_1(%arg0: i32) -> (i32, i32) {
    %c0_i32 = arith.constant 0 : i32
    %c0_i32_0 = arith.constant 0 : i32
    return %arg0, %c0_i32 : i32, i32
  }
}

</mosaic_0001>

<bundles_post_ra>
// kernel: tpu_custom_call.1
= control target key start
LH: loop header
LB: loop body
LE: loop exit
PB: predicated region body
PF: predicated region fallthrough
CT: control target
= control target key end

     0   :  { %s208_s6 = smov 0   ;;  %s228_s0 = inlined_call_operand.vmem [shape: s32[64,3], index: 0, kind: input, shape index: {}]   ;;  %s229_s1 = inlined_call_operand.vmem [shape: s32[64,3], index: 1, kind: output, shape index: {}]  }
   0x1 LB: > { %s185_s7 = sadd.s32 4294967295, %s210_s6   ;;  %p189_p0 = scmp.ge.s32.totalorder %s210_s6, 1  ;;  %s210_s6 = sphi %s208_s6, %s11_s6  }
   0x2   : > { %p88_p1 = scmp.lt.s32.totalorder %s210_s6, 3 }
   0x4   : > { %p89_p2 = pnand %p189_p0, %p88_p1 }
   0x5   : > { %s190_s8 = sshll.u32 (!%p89_p2), %s185_s7, 2 }
   0x6   : > { %92 = sbr.rel (%p89_p2) target bundleno = 17 (0x11), region = 24  ;;  %p109_p3 = scmp.lt.s32.totalorder (!%p89_p2), %s190_s8, 7 }
   0xb   : > { %s231_s8 = smov (!%p109_p3, %s190_s8), 7  ;;  %vm124_vm0 = vcmask 23552  }
   0xc   : > { %s191_s9 = sshll.u32 %s231_s8, 3 }
   0xd   : > { %s112_s12 = scalar_lea.vmem %s228_s0, %s191_s9  ;;  %s118_s15 = scalar_lea.vmem %s229_s1, %s191_s9 }
   0xe   : > { %v120_v0 = vld [vmem:[%s112_s12] sm:$0xff]  ;;  %v121_v1 = vld [vmem:[%s112_s12 + $0x8] sm:$0xff]  ;;  %v122_v2 = vld [vmem:[%s112_s12 + $0x10] sm:$0xff] }
   0xf   : > { %125 = vst.msk [vmem:[%s118_s15] sm:$0xff] %vm124_vm0, %v120_v0  ;;  %v123_v3 = vld [vmem:[%s112_s12 + $0x18] sm:$0xff]  ;;  %126 = vst.msk [vmem:[%s118_s15 + $0x8] sm:$0xff] %vm124_vm0, %v121_v1 }
  0x10   : > { %127 = vst.msk [vmem:[%s118_s15 + $0x10] sm:$0xff] %vm124_vm0, %v122_v2  ;;  %128 = vst.msk [vmem:[%s118_s15 + $0x18] sm:$0xff] %vm124_vm0, %v123_v3 }
  0x11 PF: > { %s11_s6 = sadd.s32 1, %s210_s6  }
  0x12   : > { %p8_p4 = scmp.ge.s32.totalorder %s11_s6, 4  }
  0x14   :  { %10 = sbr.rel (!%p8_p4) target bundleno = 1 (0x1), region = 54 }

</bundles_post_ra>
